<compile_context>
chip_gen: v5e
topology: v5e:2x2
jax: 0.10.0
libtpu: 0.0.40
codegen_flags: <defaults>
</compile_context>

<pallas_src>
import jax
import jax.numpy as jnp
from jax.experimental import pallas as pl
from jax.experimental.pallas import tpu as pltpu

_LANE = 128
_MIN_PALLAS_BYTES = 256 * 1024   # below this a fused XLA add wins (per-call overhead)
_VMEM_BUDGET = 16 << 20          # total live block-buffer budget (2x in + 2x out)
_MIN_BLOCKS = 8                  # keep the pipeline / v7x core split fed


def _add_offset_kernel(scale_ref, bias_ref, x_ref, o_ref):
    # scale/bias are (1,1) f32 scalars in SMEM; the product rides the scalar
    # unit.  The broadcast-add runs on the VPU over the whole tile.
    offset = scale_ref[0, 0] * bias_ref[0, 0]
    x = x_ref[...]
    if not jnp.issubdtype(x.dtype, jnp.floating):
        # Integer inputs: cast on the VPU (free — kernel is HBM-bound).
        x = x.astype(o_ref.dtype)
    # Cast the offset once to the tile dtype so bf16 adds natively (no f32
    # widen/narrow round trip on v6e/v7x).
    o_ref[...] = x + offset.astype(x.dtype)


def add_offset(x, scale, bias, *, min_pallas_bytes=_MIN_PALLAS_BYTES,
               donate_x=False):
    """x: any-shape array (NCHW here). scale: scalar. bias: shape (1,)."""
    orig_shape = x.shape
    in_dtype = x.dtype
    is_float = jnp.issubdtype(in_dtype, jnp.floating)
    out_dtype = in_dtype if is_float else jnp.float32

    scale_f32 = jnp.asarray(scale, jnp.float32).reshape(())
    bias_f32 = jnp.asarray(bias, jnp.float32).reshape(())

    n = x.size
    in_item = jnp.dtype(in_dtype).itemsize
    out_item = jnp.dtype(out_dtype).itemsize

    # Fast path: tiny inputs (pallas_call/grid overhead dominates) and sizes
    # not divisible by 128 (avoids any pad/concat/slice HBM round trips) go
    # through one fused XLA elementwise add — already at HBM roofline.
    if n == 0 or n % _LANE != 0 or n * in_item < min_pallas_bytes:
        offset = scale_f32 * bias_f32
        xv = x if is_float else x.astype(jnp.float32)
        return (xv + offset.astype(xv.dtype)).astype(out_dtype)

    # Widest lane-dense last dim that divides the element count (128..4096):
    # long contiguous rows -> unmasked full-width vst and big DMA bursts.
    width = _LANE
    for w in (4096, 2048, 1024, 512, 256):
        if n % w == 0:
            width = w
            break
    rows = n // width
    x2d = x.reshape(rows, width)         # metadata-only (contiguous)

    # Block sizing: ~_VMEM_BUDGET across the 4 live buffers (~4 MiB/buffer for
    # f32) on large arrays; keep >= _MIN_BLOCKS grid steps on mid-sized arrays
    # so DMA pipelining (and a v7x 2-TC split of the "parallel" axis) is fed.
    bytes_per_row = width * (in_item + out_item)
    tile_r = max(32, (_VMEM_BUDGET // (2 * bytes_per_row)) // 32 * 32)
    cap = -(-rows // _MIN_BLOCKS)                 # cdiv(rows, MIN_BLOCKS)
    cap = max(32, ((cap + 31) // 32) * 32)
    tile_r = min(tile_r, cap)
    if tile_r >= rows:
        tile_r = rows                             # single full-extent block
    grid = (pl.cdiv(rows, tile_r),)

    scale2d = scale_f32.reshape(1, 1)
    bias2d = bias_f32.reshape(1, 1)

    kwargs = {}
    if donate_x and in_dtype == out_dtype:
        # Elementwise with identical in/out block maps -> aliasing the output
        # onto x2d (input #2) is safe.  True in-place only when the caller
        # donates x (e.g. jit(..., donate_argnums=...)); not exercised in
        # __main__ to keep the run output clean.
        kwargs["input_output_aliases"] = {2: 0}

    out2d = pl.pallas_call(
        _add_offset_kernel,
        out_shape=jax.ShapeDtypeStruct((rows, width), out_dtype),
        grid=grid,
        in_specs=[
            pl.BlockSpec(memory_space=pltpu.MemorySpace.SMEM),   # scale (1,1)
            pl.BlockSpec(memory_space=pltpu.MemorySpace.SMEM),   # bias  (1,1)
            pl.BlockSpec((tile_r, width), lambda i: (i, 0)),     # x tile
        ],
        out_specs=pl.BlockSpec((tile_r, width), lambda i: (i, 0)),
        compiler_params=pltpu.CompilerParams(
            dimension_semantics=("parallel",),
            # 16 MiB of live buffers + headroom; > v5e's 16 MiB scoped default,
            # <= v7x's 32 MiB scoped default / 64 MiB physical.
            vmem_limit_bytes=32 << 20),
        **kwargs,
    )(scale2d, bias2d, x2d)

    return out2d.reshape(orig_shape)


if __name__ == "__main__":
    key = jax.random.PRNGKey(0)

    # Deterministic parameters per the module's __init__ (scale=10, bias=0).
    scale = jnp.float32(10.0)
    bias = jnp.zeros((1,), jnp.float32)

    # Small NCHW input consistent with the structural-optimization usage.
    x = jax.random.normal(key, (2, 4, 16, 16), dtype=jnp.float32)

    # 1) Exercise the Pallas kernel on the small canonical shape.
    out = jax.block_until_ready(add_offset(x, scale, bias, min_pallas_bytes=0))
    ref = x + scale * bias[0]
    assert out.shape == x.shape and out.dtype == x.dtype
    assert jnp.allclose(out, ref, atol=1e-6), "mismatch vs reference"

    bias2 = jnp.array([0.25], jnp.float32)
    out2 = jax.block_until_ready(add_offset(x, scale, bias2, min_pallas_bytes=0))
    assert jnp.allclose(out2, x + scale * bias2[0], atol=1e-6), "mismatch (nonzero bias)"

    # 2) Default small-input fast path (plain fused XLA add).
    out_fast = jax.block_until_ready(add_offset(x, scale, bias2))
    assert jnp.allclose(out_fast, x + scale * bias2[0], atol=1e-6), "mismatch (fast path)"

    # 3) Multi-block gridded Pallas path (default threshold).
    x_big = jax.random.normal(jax.random.PRNGKey(1), (1, 1, 512, 1024), jnp.float32)
    out3 = jax.block_until_ready(add_offset(x_big, scale, bias2))
    assert jnp.allclose(out3, x_big + scale * bias2[0], atol=1e-6), "mismatch (gridded)"

    # 4) Non-128-divisible sizes take the single-pass XLA fallback (no pad/slice).
    x_odd = jax.random.normal(jax.random.PRNGKey(2), (3, 5, 7, 11), jnp.float32)
    out4 = jax.block_until_ready(add_offset(x_odd, scale, bias2))
    assert jnp.allclose(out4, x_odd + scale * bias2[0], atol=1e-6), "mismatch (odd size)"

    # 5) bf16 stays bf16 end-to-end inside the kernel (native-width adds).
    x_bf16 = x.astype(jnp.bfloat16)
    out5 = jax.block_until_ready(add_offset(x_bf16, scale, bias2, min_pallas_bytes=0))
    assert out5.dtype == jnp.bfloat16
    assert jnp.allclose(out5.astype(jnp.float32),
                        x_bf16.astype(jnp.float32) + scale * bias2[0],
                        atol=4e-2), "mismatch (bf16)"

    # 6) Integer inputs are cast to f32 inside the kernel (no wrapper pre-pass).
    x_int = jax.random.randint(jax.random.PRNGKey(3), (1, 8, 64, 64), -8, 8, jnp.int32)
    out6 = jax.block_until_ready(add_offset(x_int, scale, bias2, min_pallas_bytes=0))
    assert out6.dtype == jnp.float32
    assert jnp.allclose(out6, x_int.astype(jnp.float32) + scale * bias2[0],
                        atol=1e-6), "mismatch (int path)"

    print("KERNEL_OK")
</pallas_src>

<mosaic_0001>
module attributes {stable_mosaic.version = 11 : i64} {
  func.func @_add_offset_kernel(%arg0: i32, %arg1: memref<1x1xf32, #tpu.memory_space<smem>>, %arg2: memref<1x1xf32, #tpu.memory_space<smem>>, %arg3: memref<1x2048xf32, #tpu.memory_space<vmem>>, %arg4: memref<1x2048xf32, #tpu.memory_space<vmem>>) attributes {dimension_semantics = [#tpu.dimension_semantics<parallel>], iteration_bounds = array<i64: 1>, scalar_prefetch = 0 : i64, scratch_operands = 0 : i64, tpu.core_type = #tpu.core_type<tc>, window_params = [{transform_indices = @transform_0, window_bounds = array<i64: 1, 1>}, {transform_indices = @transform_1, window_bounds = array<i64: 1, 1>}, {transform_indices = @transform_2, window_bounds = array<i64: 1, 2048>}, {transform_indices = @transform_3, window_bounds = array<i64: 1, 2048>}]} {
    %c0 = arith.constant 0 : index
    %c0_0 = arith.constant 0 : index
    %0 = memref.load %arg1[%c0, %c0_0] : memref<1x1xf32, #tpu.memory_space<smem>>
    %c0_1 = arith.constant 0 : index
    %c0_2 = arith.constant 0 : index
    %1 = memref.load %arg2[%c0_1, %c0_2] : memref<1x1xf32, #tpu.memory_space<smem>>
    %2 = arith.mulf %0, %1 : f32
    %c0_3 = arith.constant 0 : index
    %c0_4 = arith.constant 0 : index
    %3 = vector.load %arg3[%c0_3, %c0_4] : memref<1x2048xf32, #tpu.memory_space<vmem>>, vector<1x2048xf32>
    %4 = vector.broadcast %2 : f32 to vector<1x2048xf32>
    %5 = arith.addf %3, %4 : vector<1x2048xf32>
    %c0_5 = arith.constant 0 : index
    %c0_6 = arith.constant 0 : index
    %6 = vector.load %arg4[%c0_5, %c0_6] : memref<1x2048xf32, #tpu.memory_space<vmem>>, vector<1x2048xf32>
    tpu.vector_store %arg4[%c0_5, %c0_6], %5 {strides = array<i32>} : memref<1x2048xf32, #tpu.memory_space<vmem>>, vector<1x2048xf32>,
    return
  }
  func.func @transform_0(%arg0: i32) -> (i32, i32) {
    %c0_i32 = arith.constant 0 : i32
    %c0_i32_0 = arith.constant 0 : i32
    %c0_i32_1 = arith.constant 0 : i32
    return %c0_i32, %c0_i32_0 : i32, i32
  }
  func.func @transform_1(%arg0: i32) -> (i32, i32) {
    %c0_i32 = arith.constant 0 : i32
    %c0_i32_0 = arith.constant 0 : i32
    %c0_i32_1 = arith.constant 0 : i32
    return %c0_i32, %c0_i32_0 : i32, i32
  }
  func.func @transform_2(%arg0: i32) -> (i32, i32) {
    %c0_i32 = arith.constant 0 : i32
    %c0_i32_0 = arith.constant 0 : i32
    return %arg0, %c0_i32 : i32, i32
  }
  func.func @transform_3(%arg0: i32) -> (i32, i32) {
    %c0_i32 = arith.constant 0 : i32
    %c0_i32_0 = arith.constant 0 : i32
    return %arg0, %c0_i32 : i32, i32
  }
}

</mosaic_0001>

<bundles_post_ra>
// kernel: tpu_custom_call.1
= control target key start
LH: loop header
LB: loop body
LE: loop exit
PB: predicated region body
PF: predicated region fallthrough
CT: control target
= control target key end

     0   :  { %10 = vsyncpa [#allocation5], 0  ;;  %s146_s0 = inlined_call_operand.<no memory space> [shape: f32[1,1], index: 0, kind: input, shape index: {}]   ;;  %s147_s1 = inlined_call_operand.<no memory space> [shape: f32[1,1], index: 1, kind: input, shape index: {}]   ;;  %s148_s2 = inlined_call_operand.hbm [shape: f32[1,2048], index: 2, kind: input, shape index: {}]   ;;  %s149_s3 = inlined_call_operand.hbm [shape: f32[1,2048], index: 3, kind: output, shape index: {}]  }
   0x1   :  { %11 = vsyncpa [#allocation6], 0  ;;  %s21_s14 = sshll.u32 %s148_s2, 4  ;;  %s112_s15 = smov [#allocation4]   ;;  %s22_s14 = int_to_ptr.hbm [resolvable:$true] %s21_s14 }
   0x2   :  { %s23_s16 = sshll.u32 %s112_s15, 4  ;;  %s24_s16 = int_to_ptr.vmem [resolvable:$true] %s23_s16 }
   0x3   :  { %26 = dma.hbm_to_vmem [thread:$0]  %s22_s14, 256, %s24_s16, [#allocation5]  }
   0x4   :  { %108 = dma.done.wait [#allocation5], 256  }
   0x5   :  { %109 = vsyncadd [#allocation5], 4294967040  ;;  %s33_s21 = smul.f32 %s147_s1, %s146_s0  ;;  %s113_s22 = smov [#allocation7]   ;;  %v34_v1 = vld [vmem:[#allocation4] sm:$0xff]  ;;  %v35_v2 = vld [vmem:[#allocation4 + $0x8] sm:$0xff] }
   0x6   :  { %s46_s23 = sshll.u32 %s113_s22, 4  ;;  %s48_s2 = sshll.u32 %s149_s3, 4  ;;  %s47_s23 = int_to_ptr.vmem [resolvable:$true] %s46_s23  ;;  %s49_s2 = int_to_ptr.hbm [resolvable:$true] %s48_s2 }
   0x7   :  { %v36_v0 = vstv %s33_s21 }
   0x8   :  { %v37_v3 = vadd.f32 %v36_v0, %v34_v1  ;;  %v38_v4 = vadd.f32 %v36_v0, %v35_v2 }
   0xa   :  { %39 = vst [vmem:[#allocation7] sm:$0xff] %v37_v3 }
   0xb   :  { %40 = vst [vmem:[#allocation7 + $0x8] sm:$0xff] %v38_v4 }
   0xc   :  { %51 = dma.vmem_to_hbm [thread:$0]  %s47_s23, 256, %s49_s2, [#allocation6]  }
   0xd   :  { %110 = dma.done.wait [#allocation6], 256  }
   0xe   :  { %111 = vsyncadd [#allocation6], 4294967040 }
   0xf   :  { %56 = vsyncpa [#allocation5], 1 }
  0x10   :  { %57 = vsyncpa [#allocation6], 1 }

</bundles_post_ra>
